<compile_context>
chip_gen: v7x
topology: tpu7x:2x2x1
jax: 0.10.0
libtpu: 0.0.40
codegen_flags: <defaults>
</compile_context>

<pallas_src>
import jax
import jax.numpy as jnp
from jax.experimental import pallas as pl
from jax.experimental.pallas import tpu as pltpu


# ---------------------------------------------------------------------------
# Kernel
# ---------------------------------------------------------------------------
def _lbs_kernel(skel_ref, w_ref, vert_ref, o_ref):
    """One grid step = one lane-dense V-tile (all batches at once).

    skel_ref : (B*4, 4*J) f32   skel_ref[b*4 + i, l*J + j] = skeletonM[b, j, i, l]
    w_ref    : (J, TV)    f32   skinning weights, joint-major (V on lanes)
    vert_ref : (4, TV)    f32   homogeneous vertex origins, coord-major (V on lanes)
    o_ref    : (B*4, TV)  f32   o_ref[b*4 + i, v] = vertice_new[b, v, i]
    """
    w = w_ref[...]                       # (J, TV)
    vert = vert_ref[...]                 # (4, TV)
    J, tv = w.shape

    # wv[l*J + j, v] = vert[l, v] * w[j, v]      (VPU; J==8 keeps slabs sublane-aligned)
    wv = (vert[:, None, :] * w[None, :, :]).reshape(4 * J, tv)

    # Single MXU matmul: (B*4, 4J) @ (4J, TV), f32 accumulation.
    o_ref[...] = jnp.dot(skel_ref[...], wv, preferred_element_type=jnp.float32)


# ---------------------------------------------------------------------------
# Wrapper
# ---------------------------------------------------------------------------
_MAX_TV = 16384  # lanes; ~6 MiB VMEM per tile incl. double buffers on every TPU gen


def _choose_v_tile(V, max_tv=_MAX_TV):
    """Lane-dense tile; >= 2 grid steps whenever V > 128 (v7x megacore)."""
    LANE = 128
    if V <= LANE:
        return V                                    # single full block (== array dim)
    half = -(-((V + 1) // 2) // LANE) * LANE        # ceil(ceil(V/2)/128)*128
    return min(max_tv, half)


def prepare_lbs_params(weights, joints_origin_inv, T_change, vertices_origin4):
    """One-time (module init) parameter preparation — kernel-friendly layouts.

    weights            : (V, J)
    joints_origin_inv  : (J, 4, 4)   (the torch module stores inv(joints_origin))
    T_change           : (J, 4, 4)
    vertices_origin4   : (V, 4)      homogeneous vertex coordinates
    """
    f32 = jnp.float32
    M = jnp.einsum("jab,jbc->jac", jnp.asarray(T_change, f32),
                   jnp.asarray(joints_origin_inv, f32), precision="highest")   # (J,4,4)
    w_t = jnp.asarray(weights, f32).T                                          # (J, V)
    vert_t = jnp.asarray(vertices_origin4, f32).T                              # (4, V)
    return {"M": M, "w_t": w_t, "vert_t": vert_t}


def linear_blend_skinning(trans, params):
    """Pallas LBS forward.

    trans  : (B, J, 4, 4)  per-joint transforms (already select_mask'ed FK output)
    params : dict from prepare_lbs_params()
    returns: (B, V, 4, 1)  matching the torch module's output layout
    """
    # TODO(synk): ForwardKinematics (self.fk, euler-angle hierarchical FK producing
    # `trans` from joint angles) is not defined in the provided source; the kernel
    # consumes the per-joint transforms directly.
    f32 = jnp.float32
    M, w_t, vert_t = params["M"], params["w_t"], params["vert_t"]
    B, J = trans.shape[0], trans.shape[1]
    V = w_t.shape[1]

    # skel[b,j,i,l] = (trans @ T_change @ inv(joints_origin))[b,j,i,l], laid out so the
    # whole batch stacks on the MXU M dimension and K runs over (l, j).  Tiny einsum.
    skel_flat = jnp.einsum("bjik,jkl->bilj", jnp.asarray(trans, f32), M,
                           precision="highest").reshape(B * 4, 4 * J)          # (B*4, 4J)

    tv = _choose_v_tile(V)
    grid = (pl.cdiv(V, tv),)

    out_flat = pl.pallas_call(
        _lbs_kernel,
        out_shape=jax.ShapeDtypeStruct((B * 4, V), f32),
        grid_spec=pltpu.PrefetchScalarGridSpec(
            num_scalar_prefetch=0,
            grid=grid,
            in_specs=[
                pl.BlockSpec((B * 4, 4 * J), lambda v: (0, 0)),   # resident across V-tiles
                pl.BlockSpec((J, tv), lambda v: (0, v)),          # streamed, lane-dense
                pl.BlockSpec((4, tv), lambda v: (0, v)),          # streamed, lane-dense
            ],
            out_specs=pl.BlockSpec((B * 4, tv), lambda v: (0, v)),
        ),
        compiler_params=pltpu.CompilerParams(dimension_semantics=("parallel",)),
    )(skel_flat, w_t, vert_t)

    # Match the torch module's (B, V, 4, 1) layout.  NOTE(perf): for this
    # bandwidth-bound op the transpose is an extra HBM pass; consumers that can
    # take the lane-major (B*4, V) layout should use `out_flat` directly.
    return jnp.transpose(out_flat.reshape(B, 4, V), (0, 2, 1))[..., None]


# ---------------------------------------------------------------------------
# Pure-JAX reference (mirror of the torch forward, post-FK)
# ---------------------------------------------------------------------------
def lbs_reference(trans, weights, joints_origin_inv, T_change, vertices_origin4):
    f32 = jnp.float32
    trans_after = jnp.matmul(jnp.asarray(trans, f32), jnp.asarray(T_change, f32)[None],
                             precision="highest")
    skeletonM = jnp.matmul(trans_after, jnp.asarray(joints_origin_inv, f32)[None],
                           precision="highest")
    transform = jnp.einsum("ij,bjkl->bikl", jnp.asarray(weights, f32), skeletonM,
                           precision="highest")
    vert = jnp.asarray(vertices_origin4, f32)[:, :, None]                      # (V,4,1)
    return jnp.einsum("bnij,njk->bnik", transform, vert, precision="highest")  # (B,V,4,1)


# ---------------------------------------------------------------------------
# Test
# ---------------------------------------------------------------------------
def _make_inputs(key, B, J, V):
    k1, k2, k3, k4, k5 = jax.random.split(key, 5)
    # Skinning weights (rows sum to 1).
    weights = jax.nn.softmax(jax.random.normal(k1, (V, J)), axis=-1).astype(jnp.float32)
    # Stored parameter is inv(joints_origin): near-identity invertible 4x4.
    joints_origin_inv = (jnp.eye(4)[None]
                         + 0.1 * jax.random.normal(k2, (J, 4, 4))).astype(jnp.float32)
    # T_change with its translation column zeroed, per __init__.
    T_change = jnp.eye(4)[None] + 0.1 * jax.random.normal(k3, (J, 4, 4))
    T_change = T_change.at[:, :-1, -1].set(0.0).astype(jnp.float32)
    # Homogeneous vertex origins (last coordinate = 1), per __init__.
    verts = jax.random.normal(k4, (V, 3))
    vertices_origin4 = jnp.concatenate([verts, jnp.ones((V, 1))], axis=-1).astype(jnp.float32)
    # Per-joint transforms (FK output, already select_mask'ed): affine, last row [0,0,0,1].
    trans = jnp.eye(4)[None, None] + 0.1 * jax.random.normal(k5, (B, J, 4, 4))
    trans = trans.at[:, :, -1, :].set(jnp.array([0.0, 0.0, 0.0, 1.0])).astype(jnp.float32)
    return trans, weights, joints_origin_inv, T_change, vertices_origin4


if __name__ == "__main__":
    key = jax.random.PRNGKey(0)
    B, J = 2, 8
    ok = True
    # V=128: single tile; V=1000: 2-step grid + non-128-aligned boundary masking.
    for V in (128, 1000):
        key, sub = jax.random.split(key)
        trans, weights, joints_origin_inv, T_change, vertices_origin4 = _make_inputs(
            sub, B, J, V)

        params = prepare_lbs_params(weights, joints_origin_inv, T_change, vertices_origin4)
        out = linear_blend_skinning(trans, params)
        out = jax.block_until_ready(out)

        ref = lbs_reference(trans, weights, joints_origin_inv, T_change, vertices_origin4)
        assert out.shape == (B, V, 4, 1), out.shape
        err = float(jnp.max(jnp.abs(out - ref)))
        assert jnp.allclose(out, ref, rtol=1e-4, atol=1e-4), f"V={V}: max abs err {err}"
        ok = ok and True

    if ok:
        print("KERNEL_OK")
</pallas_src>

<mosaic_0001>
module attributes {stable_mosaic.version = 11 : i64} {
  func.func @_lbs_kernel(%arg0: i32, %arg1: memref<8x32xf32, #tpu.memory_space<vmem>>, %arg2: memref<8x128xf32, #tpu.memory_space<vmem>>, %arg3: memref<4x128xf32, #tpu.memory_space<vmem>>, %arg4: memref<8x128xf32, #tpu.memory_space<vmem>>) attributes {dimension_semantics = [#tpu.dimension_semantics<parallel>], iteration_bounds = array<i64: 1>, scalar_prefetch = 0 : i64, scratch_operands = 0 : i64, tpu.core_type = #tpu.core_type<tc>, window_params = [{pipeline_mode = #tpu.pipeline_mode<synchronous>, transform_indices = @transform_0, window_bounds = array<i64: 8, 32>}, {transform_indices = @transform_1, window_bounds = array<i64: 8, 128>}, {transform_indices = @transform_2, window_bounds = array<i64: 4, 128>}, {transform_indices = @transform_3, window_bounds = array<i64: 8, 128>}]} {
    %c0 = arith.constant 0 : index
    %c0_0 = arith.constant 0 : index
    %0 = vector.load %arg2[%c0, %c0_0] : memref<8x128xf32, #tpu.memory_space<vmem>>, vector<8x128xf32>
    %c0_1 = arith.constant 0 : index
    %c0_2 = arith.constant 0 : index
    %1 = vector.load %arg3[%c0_1, %c0_2] : memref<4x128xf32, #tpu.memory_space<vmem>>, vector<4x128xf32>
    %2 = vector.shape_cast %1 : vector<4x128xf32> to vector<4x1x128xf32>
    %3 = vector.shape_cast %0 : vector<8x128xf32> to vector<1x8x128xf32>
    %4 = vector.broadcast %2 : vector<4x1x128xf32> to vector<4x8x128xf32>
    %5 = vector.broadcast %3 : vector<1x8x128xf32> to vector<4x8x128xf32>
    %6 = arith.mulf %4, %5 : vector<4x8x128xf32>
    %7 = vector.shape_cast %6 : vector<4x8x128xf32> to vector<32x128xf32>
    %c0_3 = arith.constant 0 : index
    %c0_4 = arith.constant 0 : index
    %8 = vector.load %arg1[%c0_3, %c0_4] : memref<8x32xf32, #tpu.memory_space<vmem>>, vector<8x32xf32>
    %cst = arith.constant dense<0.000000e+00> : vector<8x128xf32>
    %9 = tpu.matmul %8, %7, %cst {dimension_numbers = #tpu.dot_dimension_numbers<[1], [0], [0], [1], [0, 0, 1, 1], [], []>} : vector<8x32xf32>, vector<32x128xf32>, vector<8x128xf32> -> vector<8x128xf32>
    %c0_5 = arith.constant 0 : index
    %c0_6 = arith.constant 0 : index
    %10 = vector.load %arg4[%c0_5, %c0_6] : memref<8x128xf32, #tpu.memory_space<vmem>>, vector<8x128xf32>
    tpu.vector_store %arg4[%c0_5, %c0_6], %9 {strides = array<i32>} : memref<8x128xf32, #tpu.memory_space<vmem>>, vector<8x128xf32>,
    return
  }
  func.func @transform_0(%arg0: i32) -> (i32, i32) {
    %c0_i32 = arith.constant 0 : i32
    %c0_i32_0 = arith.constant 0 : i32
    %c0_i32_1 = arith.constant 0 : i32
    return %c0_i32, %c0_i32_0 : i32, i32
  }
  func.func @transform_1(%arg0: i32) -> (i32, i32) {
    %c0_i32 = arith.constant 0 : i32
    %c0_i32_0 = arith.constant 0 : i32
    return %c0_i32, %arg0 : i32, i32
  }
  func.func @transform_2(%arg0: i32) -> (i32, i32) {
    %c0_i32 = arith.constant 0 : i32
    %c0_i32_0 = arith.constant 0 : i32
    return %c0_i32, %arg0 : i32, i32
  }
  func.func @transform_3(%arg0: i32) -> (i32, i32) {
    %c0_i32 = arith.constant 0 : i32
    %c0_i32_0 = arith.constant 0 : i32
    return %c0_i32, %arg0 : i32, i32
  }
}

</mosaic_0001>

<bundles_post_ra>
// kernel: tpu_custom_call.1
= control target key start
LH: loop header
LB: loop body
LE: loop exit
PB: predicated region body
PF: predicated region fallthrough
CT: control target
= control target key end

     0   :  { %8 = vsyncpa [#allocation3], 0  ;;  %s351_s0 = inlined_call_operand.hbm [shape: f32[8,32], index: 0, kind: input, shape index: {}]   ;;  %s352_s1 = inlined_call_operand.hbm [shape: f32[8,128], index: 1, kind: input, shape index: {}]   ;;  %s353_s2 = inlined_call_operand.vmem [shape: f32[4,128], index: 2, kind: input, shape index: {}]   ;;  %s354_s3 = inlined_call_operand.hbm [shape: f32[8,128], index: 3, kind: output, shape index: {}]  }
   0x1   :  { %9 = vsyncpa [#allocation6], 0 }
   0x2   :  { %10 = vsyncpa [#allocation4], 0  ;;  %s285_s12 = smov [#allocation2]   ;;  %s286_s14 = smov [#allocation5]  }
   0x3   :  { %s17_s13 = sshll.u32 %s285_s12, 4  ;;  %s27_s15 = sshll.u32 %s286_s14, 4  ;;  %s18_s13 = int_to_ptr.vmem [resolvable:$true] %s17_s13  ;;  %s28_s15 = int_to_ptr.vmem [resolvable:$true] %s27_s15 }
   0x4   :  { %s213_s18 = scalar_lea.hbm %s351_s0, 128 }
   0x5   :  { %p214_p0 = scmp.ne.s32.totalorder %s351_s0, %s213_s18  ;;  %p217_p1 = scmp.lt.u32.totalorder %s213_s18, %s351_s0 }
   0x7   :  { %p219_p2 = pnand %p217_p1, %p214_p0 }
   0x9   :  { %222 = shalt.err (!%p219_p2)
}
   0xa   :  { %s223_s23 = scalar_lea.vmem %s18_s13, 128  ;;  %p228_p4 = scmp.lt.s32.totalorder %s18_s13, %s18_s13 }
   0xb   :  { %p224_p3 = scmp.ne.s32.totalorder %s18_s13, %s223_s23  ;;  %p229_p5 = scmp.lt.s32.totalorder %s223_s23, %s223_s23 }
   0xd   :  { %p230_p6 = por %p229_p5, %p228_p4 }
   0xf   :  { %p231_p7 = pnand %p230_p6, %p224_p3 }
  0x11   :  { %234 = shalt.err (!%p231_p7)
}
  0x12   :  { %20 = dma.hbm_to_vmem [thread:$0]  %s351_s0, 128, %s18_s13, [#allocation3]  }
  0x13   :  { %s235_s28 = scalar_lea.hbm %s352_s1, 128 }
  0x14   :  { %p236_p8 = scmp.ne.s32.totalorder %s352_s1, %s235_s28  ;;  %p239_p9 = scmp.lt.u32.totalorder %s235_s28, %s352_s1 }
  0x16   :  { %p241_p10 = pnand %p239_p9, %p236_p8 }
  0x18   :  { %244 = shalt.err (!%p241_p10)
}
  0x19   :  { %s245_s6 = scalar_lea.vmem %s28_s15, 128  ;;  %p250_p12 = scmp.lt.s32.totalorder %s28_s15, %s28_s15 }
  0x1a   :  { %p246_p11 = scmp.ne.s32.totalorder %s28_s15, %s245_s6  ;;  %p251_p13 = scmp.lt.s32.totalorder %s245_s6, %s245_s6 }
  0x1c   :  { %p252_p0 = por %p251_p13, %p250_p12 }
  0x1e   :  { %p253_p1 = pnand %p252_p0, %p246_p11 }
  0x20   :  { %256 = shalt.err (!%p253_p1)
}
  0x21   :  { %30 = dma.hbm_to_vmem [thread:$0]  %s352_s1, 128, %s28_s15, [#allocation6]  }
  0x22   :  { %279 = dma.done.wait [#allocation3], 128  }
  0x23   :  { %280 = vsyncadd [#allocation3], 4294967168 }
  0x24   :  { %281 = dma.done.wait [#allocation6], 128  }
  0x25   :  { %282 = vsyncadd [#allocation6], 4294967168  ;;  %v53_v0 = vlaneseq  ;;  %v287_v1 = vmov 0.0|0.0   ;;  %v288_v2 = vmov 1966171168   ;;  %vm289_vm0 = vmmov 0  }
  0x26   :  { %200 = vmatprep.subr.bf16.mxu0 %v287_v1  ;;  %v51_v3 = vunpack.c.l.s4 %v288_v2  ;;  %v290_v5 = vmov 0.0   ;;  %v182_v9 = vld.sshfl [vmem:[%s353_s2] sm:$0x33 pattern:$0x75316420]  ;;  %v39_v12 = vld [vmem:[#allocation5] sm:$0xff] }
  0x27   :  { %v54_v4 = vshrl.u32 %v53_v0, 7  ;;  %197 = vmatprep.mubr.msk.f32.mxu0 %vm289_vm0, %v290_v5  ;;  %v49_v10 = vcombine.high %v182_v9, %v182_v9  ;;  %v90_v26 = vld [vmem:[#allocation2] sm:$0xff]  ;;  %vm91_vm1 = vcmask 261120   ;;  %s291_s1 = smov [#allocation7]  }
  0x28   :  { %v52_v6 = vunpack.c.0.s8 %v51_v3  ;;  %s172_s2 = sshll.u32 %s291_s1, 4  ;;  %s173_s2 = int_to_ptr.vmem [resolvable:$true] %s172_s2 }
  0x29   :  { %v68_v8 = vsub.s32 0, %v54_v4  ;;  %s257_s10 = scalar_lea.vmem %s173_s2, 128  ;;  %p262_p3 = scmp.lt.s32.totalorder %s173_s2, %s173_s2 }
  0x2a   :  { %v55_v7 = vsub.s32 %v52_v6, %v54_v4  ;;  %p258_p2 = scmp.ne.s32.totalorder %s173_s2, %s257_s10  ;;  %p263_p4 = scmp.lt.s32.totalorder %s257_s10, %s257_s10 }
  0x2c   :  { %v56_v11 = vrot.slane %v182_v9, %v55_v7  ;;  %v63_v13 = vrot.slane %v49_v10, %v55_v7  ;;  %p264_p5 = por %p263_p4, %p262_p3 }
  0x2e   :  { %v64_v14 = vcombine.high %v56_v11, %v56_v11  ;;  %v69_v15 = vrot.slane %v56_v11, %v68_v8  ;;  %v65_v16 = vcombine.high %v63_v13, %v63_v13  ;;  %v73_v17 = vrot.slane %v63_v13, %v68_v8  ;;  %p265_p6 = pnand %p264_p5, %p258_p2 }
  0x30   :  { %v86_v18 = vmul.f32 %v69_v15, %v39_v12  ;;  %v77_v19 = vrot.slane %v64_v14, %v68_v8  ;;  %v87_v20 = vmul.f32 %v73_v17, %v39_v12  ;;  %v81_v21 = vrot.slane %v65_v16, %v68_v8 }
  0x32   :  { %v88_v22 = vmul.f32 %v77_v19, %v39_v12  ;;  %v201_v23 = vpack.c.bf16 %v87_v20, %v86_v18  ;;  %v89_v24 = vmul.f32 %v81_v21, %v39_v12 }
  0x34   :  { %202 = vmatpush3.bf16.msra.mxu0 %v201_v23  ;;  %v204_v25 = vpack.c.bf16 %v89_v24, %v88_v22 }
  0x35   :  { %203 = vmatprep.subr.bf16.mxu0 %v287_v1 }
  0x38   :  { %205 = vmatpush3.bf16.msra.mxu0 %v204_v25 }
  0x3b   :  { %198 = vmatmul.mubr.msk.f32.vlgmr.msra.gmra.mrb[0].mxu0 %vm91_vm1, %v90_v26 }
 0x10e   :  { %v161_v27 = vpop.f32.mrb[0].mxu0 }
 0x10f   :  { %165 = vst [vmem:[#allocation7] sm:$0xff] %v161_v27  ;;  %v199_v28 = vpop.f32.mrb[1].mxu0 }
 0x110   :  { %268 = shalt.err (!%p265_p6)
}
 0x111   :  { %s269_s13 = scalar_lea.hbm %s354_s3, 128 }
 0x112   :  { %p270_p7 = scmp.ne.s32.totalorder %s354_s3, %s269_s13  ;;  %p273_p8 = scmp.lt.u32.totalorder %s269_s13, %s354_s3 }
 0x114   :  { %p275_p9 = pnand %p273_p8, %p270_p7 }
 0x116   :  { %278 = shalt.err (!%p275_p9)
}
 0x117   :  { %175 = dma.vmem_to_hbm [thread:$0]  %s173_s2, 128, %s354_s3, [#allocation4]  }
 0x118   :  { %283 = dma.done.wait [#allocation4], 128  }
 0x119   :  { %284 = vsyncadd [#allocation4], 4294967168 }
 0x11a   :  { %179 = vsyncpa [#allocation3], 1 }
 0x11b   :  { %180 = vsyncpa [#allocation6], 1 }
 0x11c   :  { %181 = vsyncpa [#allocation4], 1 }

</bundles_post_ra>
